<compile_context>
chip_gen: v5e
topology: v5e:2x2
jax: 0.10.0
libtpu: 0.0.40
codegen_flags: <defaults>
</compile_context>

<pallas_src>
import functools

import jax
import jax.numpy as jnp
from jax import lax
from jax.experimental import pallas as pl
from jax.experimental.pallas import tpu as pltpu


def _round_up(v, m):
    return ((v + m - 1) // m) * m


def _conv3x3_kernel(x_ref, w_ref, b_ref, m_ref, o_ref, pad_ref, slab_ref, *,
                    H, W, guard, b_blk, cin, cin_pad, cout):
    """3x3 conv, stride 1, padding 1, + bias, over a block of b_blk images.

    x_ref   : (b_blk, cin, H*W)             flattened NCHW activations (compute dtype)
    w_ref   : (cout_pad, 9*cin_pad)         taps packed along K: k = (ky*3+kx)*cin_pad + ci
    b_ref   : (cout_pad, 1)                 f32 bias
    m_ref   : (2, H*W)                      [0]: 0. where w == 0 ; [1]: 0. where w == W-1
    o_ref   : (b_blk, cout, H*W)
    pad_ref : (b_blk, cin, guard+H*W+guard) zero-guarded image scratch (fused padding)
    slab_ref: (9*cin_pad, b_blk*H*W)        im2col slab, built in place (compute dtype)
    """
    HW = H * W

    # Fused padding: zero ONLY the guard bands; the interior is fully
    # overwritten by this step's activations.  (Scratch is per-TensorCore, so
    # zeroing every step is the megacore-safe form.)
    pad_ref[:, :, :guard] = jnp.zeros((b_blk, cin, guard), pad_ref.dtype)
    pad_ref[:, :, guard + HW:] = jnp.zeros((b_blk, cin, guard), pad_ref.dtype)
    pad_ref[:, :, guard:guard + HW] = x_ref[...]

    # Sublane-padding rows of each tap group multiply zero weights, but stale
    # VMEM could hold NaN/Inf -> zero the (tiny) strips.
    if cin_pad != cin:
        zrows = jnp.zeros((cin_pad - cin, b_blk * HW), slab_ref.dtype)
        for t in range(9):
            slab_ref[t * cin_pad + cin:(t + 1) * cin_pad, :] = zrows

    mask_l = m_ref[0:1, :]                      # kills w == 0     (kx == 0 taps)
    mask_r = m_ref[1:2, :]                      # kills w == W - 1 (kx == 2 taps)

    # Build the im2col slab in place: every tap of every image is one
    # contiguous lane window of the guarded buffer (row OOB reads land in the
    # zero guards; the W-axis wraparound of the flat shift is killed by the
    # two border-column masks).
    for b in range(b_blk):
        flat = pad_ref[b]                       # (cin, 2*guard + HW)
        for ky in range(3):
            for kx in range(3):
                t = ky * 3 + kx
                s = guard - (W + 1) + ky * W + kx
                p = lax.slice(flat, (0, s), (cin, s + HW))      # (cin, HW)
                if kx == 0:
                    p = p * mask_l
                elif kx == 2:
                    p = p * mask_r
                slab_ref[t * cin_pad:t * cin_pad + cin,
                         b * HW:(b + 1) * HW] = p

    # One deep MXU matmul per step: (cout_pad, 9*cin_pad) @ (9*cin_pad, b_blk*HW),
    # f32 accumulation; bias added once on the f32 accumulator.
    acc = jnp.dot(w_ref[...], slab_ref[...], preferred_element_type=jnp.float32)
    acc = acc + b_ref[...]

    for b in range(b_blk):
        o_ref[b] = acc[:cout, b * HW:(b + 1) * HW].astype(o_ref.dtype)


def cblock_forward(x_nchw, weight, bias, stride=1, compute_dtype=None,
                   out_dtype=None):
    """Cblock forward: nn.Conv2d(in_ch, out_ch, 3, stride, padding=1, bias=True).

    x_nchw        : (N, Cin, H, W)     PyTorch NCHW layout
    weight        : (Cout, Cin, 3, 3)  PyTorch OIHW layout
    bias          : (Cout,)
    compute_dtype : optional dtype (e.g. jnp.bfloat16) for activations/weights;
                    the cast happens at the pallas_call boundary (bf16 HBM
                    traffic); accumulation is always f32.
    out_dtype     : output dtype (default: x.dtype).
    """
    N, Cin, H, W = x_nchw.shape
    Cout = weight.shape[0]
    HW = H * W

    cdt = jnp.dtype(compute_dtype) if compute_dtype is not None else jnp.dtype(x_nchw.dtype)
    out_dtype = jnp.dtype(out_dtype) if out_dtype is not None else jnp.dtype(x_nchw.dtype)
    itm = cdt.itemsize
    itm_out = out_dtype.itemsize

    sub = max(8, 32 // itm)                    # sublane packing: 8 f32 / 16 bf16
    cin_pad = _round_up(Cin, sub)
    cout_pad = _round_up(Cout, 8)
    guard = _round_up(W + 1, 128)              # zero-guard band (lane aligned)

    # Batch several images per grid step so the matmul/store lane width is a
    # few thousand; cap by a divisor of N, unroll budget, and slab VMEM.
    b_blk = max(1, min(N, (2048 + HW - 1) // HW, 16))
    slab_cap = 24 * 2**20
    b_blk = min(b_blk, max(1, slab_cap // max(1, 9 * cin_pad * HW * itm)))
    while N % b_blk:
        b_blk -= 1

    # Layout plumbing only (free minor-dim merge; parameter reshapes are tiny).
    x_flat = x_nchw.reshape(N, Cin, HW).astype(cdt)
    w_k = jnp.transpose(weight, (0, 2, 3, 1))                    # (Cout,3,3,Cin)
    w_k = jnp.pad(w_k, ((0, cout_pad - Cout), (0, 0), (0, 0), (0, cin_pad - Cin)))
    w_packed = w_k.reshape(cout_pad, 9 * cin_pad).astype(cdt)    # cast ONCE here
    b2d = jnp.pad(bias, (0, cout_pad - Cout)).reshape(cout_pad, 1).astype(jnp.float32)

    # Border-column masks for the flat-shift wraparound.
    col = jnp.arange(HW, dtype=jnp.int32) % W
    masks = jnp.stack([col != 0, col != (W - 1)]).astype(cdt)    # (2, HW)

    kernel = functools.partial(_conv3x3_kernel, H=H, W=W, guard=guard,
                               b_blk=b_blk, cin=Cin, cin_pad=cin_pad, cout=Cout)

    # VMEM budget for the per-step working set.
    est = (2 * b_blk * Cin * HW * itm                            # input blocks (x2)
           + 2 * b_blk * Cout * HW * itm_out                     # output blocks (x2)
           + 2 * (cout_pad * 9 * cin_pad * itm + cout_pad * 4 + 2 * HW * itm)
           + b_blk * Cin * (2 * guard + HW) * itm                # guarded scratch
           + 9 * cin_pad * b_blk * HW * itm                      # im2col slab
           + cout_pad * b_blk * HW * 4                           # f32 accumulator
           + (4 << 20))                                          # slack
    try:
        cap = int(pltpu.get_tpu_info().vmem_capacity_bytes)
    except Exception:
        cap = 64 * 2**20
    vmem_limit = int(min(max(est, 16 * 2**20), int(cap * 0.75)))

    out_flat = pl.pallas_call(
        kernel,
        out_shape=jax.ShapeDtypeStruct((N, Cout, HW), out_dtype),
        grid_spec=pltpu.PrefetchScalarGridSpec(
            num_scalar_prefetch=0,
            grid=(N // b_blk,),
            in_specs=[
                pl.BlockSpec((b_blk, Cin, HW), lambda n: (n, 0, 0)),
                pl.BlockSpec((cout_pad, 9 * cin_pad), lambda n: (0, 0)),
                pl.BlockSpec((cout_pad, 1), lambda n: (0, 0)),
                pl.BlockSpec((2, HW), lambda n: (0, 0)),
            ],
            out_specs=pl.BlockSpec((b_blk, Cout, HW), lambda n: (n, 0, 0)),
            scratch_shapes=[
                pltpu.VMEM((b_blk, Cin, 2 * guard + HW), cdt),
                pltpu.VMEM((9 * cin_pad, b_blk * HW), cdt),
            ],
        ),
        compiler_params=pltpu.CompilerParams(
            dimension_semantics=("parallel",),
            vmem_limit_bytes=vmem_limit,
        ),
    )(x_flat, w_packed, b2d, masks)

    out = out_flat.reshape(N, Cout, H, W)

    if stride > 1:
        # conv(k=3, pad=1, stride=s) output == stride-1 output sampled at ::s.
        out = out[:, :, ::stride, ::stride]
    return out


def _reference_conv(x_nchw, weight, bias, stride=1):
    # Pure-JAX reference (same semantics as nn.Conv2d(k=3, padding=1, bias=True)).
    out = lax.conv_general_dilated(
        x_nchw, weight,
        window_strides=(stride, stride),
        padding=((1, 1), (1, 1)),
        dimension_numbers=("NCHW", "OIHW", "NCHW"),
    )
    return out + bias.reshape(1, -1, 1, 1)


if __name__ == "__main__":
    key = jax.random.PRNGKey(0)
    k_x, k_w, k_b = jax.random.split(key, 3)

    N, Cin, Cout, H, W = 2, 4, 8, 16, 16

    x = jax.random.normal(k_x, (N, Cin, H, W), dtype=jnp.float32)
    weight = 0.1 * jax.random.normal(k_w, (Cout, Cin, 3, 3), dtype=jnp.float32)
    bias = 0.1 * jax.random.normal(k_b, (Cout,), dtype=jnp.float32)

    # f32 path, stride=1 (the Cblock default).
    out = jax.block_until_ready(cblock_forward(x, weight, bias, stride=1))
    ref = _reference_conv(x, weight, bias, stride=1)
    assert out.shape == ref.shape == (N, Cout, H, W)
    assert jnp.allclose(out, ref, atol=1e-4, rtol=1e-4), "f32 mismatch vs reference"

    # bf16 end-to-end path (bf16 HBM traffic + bf16 MXU operands, f32 accumulation).
    out_bf16 = jax.block_until_ready(
        cblock_forward(x, weight, bias, stride=1, compute_dtype=jnp.bfloat16))
    assert jnp.allclose(out_bf16, ref, atol=5e-2, rtol=5e-2), "bf16 mismatch vs reference"

    # stride=2 path (subsample of the stride-1 output).
    out_s2 = jax.block_until_ready(cblock_forward(x, weight, bias, stride=2))
    ref_s2 = _reference_conv(x, weight, bias, stride=2)
    assert out_s2.shape == ref_s2.shape
    assert jnp.allclose(out_s2, ref_s2, atol=1e-4, rtol=1e-4), "stride-2 mismatch"

    print("KERNEL_OK")
</pallas_src>

<mosaic_0001>
module attributes {stable_mosaic.version = 11 : i64} {
  func.func @_conv3x3_kernel(%arg0: i32, %arg1: memref<2x4x256xf32, #tpu.memory_space<vmem>>, %arg2: memref<8x72xf32, #tpu.memory_space<vmem>>, %arg3: memref<8x1xf32, #tpu.memory_space<vmem>>, %arg4: memref<2x256xf32, #tpu.memory_space<vmem>>, %arg5: memref<2x8x256xf32, #tpu.memory_space<vmem>>, %arg6: memref<2x4x512xf32, #tpu.memory_space<vmem>>, %arg7: memref<72x512xf32, #tpu.memory_space<vmem>>) attributes {dimension_semantics = [#tpu.dimension_semantics<parallel>], iteration_bounds = array<i64: 1>, scalar_prefetch = 0 : i64, scratch_operands = 2 : i64, tpu.core_type = #tpu.core_type<tc>, window_params = [{transform_indices = @transform_0, window_bounds = array<i64: 2, 4, 256>}, {pipeline_mode = #tpu.pipeline_mode<synchronous>, transform_indices = @transform_1, window_bounds = array<i64: 8, 72>}, {pipeline_mode = #tpu.pipeline_mode<synchronous>, transform_indices = @transform_2, window_bounds = array<i64: 8, 1>}, {pipeline_mode = #tpu.pipeline_mode<synchronous>, transform_indices = @transform_3, window_bounds = array<i64: 2, 256>}, {transform_indices = @transform_4, window_bounds = array<i64: 2, 8, 256>}]} {
    %cst = arith.constant 0.000000e+00 : f32
    %0 = vector.broadcast %cst : f32 to vector<2x4x128xf32>
    %c0 = arith.constant 0 : index
    %c0_0 = arith.constant 0 : index
    %c0_1 = arith.constant 0 : index
    %1 = vector.load %arg6[%c0, %c0_0, %c0_1] : memref<2x4x512xf32, #tpu.memory_space<vmem>>, vector<2x4x128xf32>
    tpu.vector_store %arg6[%c0, %c0_0, %c0_1], %0 {strides = array<i32>} : memref<2x4x512xf32, #tpu.memory_space<vmem>>, vector<2x4x128xf32>,
    %cst_2 = arith.constant 0.000000e+00 : f32
    %2 = vector.broadcast %cst_2 : f32 to vector<2x4x128xf32>
    %c0_3 = arith.constant 0 : index
    %c0_4 = arith.constant 0 : index
    %c384 = arith.constant 384 : index
    %3 = vector.load %arg6[%c0_3, %c0_4, %c384] : memref<2x4x512xf32, #tpu.memory_space<vmem>>, vector<2x4x128xf32>
    tpu.vector_store %arg6[%c0_3, %c0_4, %c384], %2 {strides = array<i32>} : memref<2x4x512xf32, #tpu.memory_space<vmem>>, vector<2x4x128xf32>,
    %c0_5 = arith.constant 0 : index
    %c0_6 = arith.constant 0 : index
    %c0_7 = arith.constant 0 : index
    %4 = vector.load %arg1[%c0_5, %c0_6, %c0_7] : memref<2x4x256xf32, #tpu.memory_space<vmem>>, vector<2x4x256xf32>
    %c0_8 = arith.constant 0 : index
    %c0_9 = arith.constant 0 : index
    %c128 = arith.constant 128 : index
    %5 = vector.load %arg6[%c0_8, %c0_9, %c128] : memref<2x4x512xf32, #tpu.memory_space<vmem>>, vector<2x4x256xf32>
    tpu.vector_store %arg6[%c0_8, %c0_9, %c128], %4 {strides = array<i32>} : memref<2x4x512xf32, #tpu.memory_space<vmem>>, vector<2x4x256xf32>,
    %cst_10 = arith.constant 0.000000e+00 : f32
    %6 = vector.broadcast %cst_10 : f32 to vector<4x512xf32>
    %c4 = arith.constant 4 : index
    %c0_11 = arith.constant 0 : index
    %7 = vector.load %arg7[%c4, %c0_11] : memref<72x512xf32, #tpu.memory_space<vmem>>, vector<4x512xf32>
    tpu.vector_store %arg7[%c4, %c0_11], %6 {strides = array<i32>} : memref<72x512xf32, #tpu.memory_space<vmem>>, vector<4x512xf32>,
    %c12 = arith.constant 12 : index
    %c0_12 = arith.constant 0 : index
    %8 = vector.load %arg7[%c12, %c0_12] : memref<72x512xf32, #tpu.memory_space<vmem>>, vector<4x512xf32>
    tpu.vector_store %arg7[%c12, %c0_12], %6 {strides = array<i32>} : memref<72x512xf32, #tpu.memory_space<vmem>>, vector<4x512xf32>,
    %c20 = arith.constant 20 : index
    %c0_13 = arith.constant 0 : index
    %9 = vector.load %arg7[%c20, %c0_13] : memref<72x512xf32, #tpu.memory_space<vmem>>, vector<4x512xf32>
    tpu.vector_store %arg7[%c20, %c0_13], %6 {strides = array<i32>} : memref<72x512xf32, #tpu.memory_space<vmem>>, vector<4x512xf32>,
    %c28 = arith.constant 28 : index
    %c0_14 = arith.constant 0 : index
    %10 = vector.load %arg7[%c28, %c0_14] : memref<72x512xf32, #tpu.memory_space<vmem>>, vector<4x512xf32>
    tpu.vector_store %arg7[%c28, %c0_14], %6 {strides = array<i32>} : memref<72x512xf32, #tpu.memory_space<vmem>>, vector<4x512xf32>,
    %c36 = arith.constant 36 : index
    %c0_15 = arith.constant 0 : index
    %11 = vector.load %arg7[%c36, %c0_15] : memref<72x512xf32, #tpu.memory_space<vmem>>, vector<4x512xf32>
    tpu.vector_store %arg7[%c36, %c0_15], %6 {strides = array<i32>} : memref<72x512xf32, #tpu.memory_space<vmem>>, vector<4x512xf32>,
    %c44 = arith.constant 44 : index
    %c0_16 = arith.constant 0 : index
    %12 = vector.load %arg7[%c44, %c0_16] : memref<72x512xf32, #tpu.memory_space<vmem>>, vector<4x512xf32>
    tpu.vector_store %arg7[%c44, %c0_16], %6 {strides = array<i32>} : memref<72x512xf32, #tpu.memory_space<vmem>>, vector<4x512xf32>,
    %c52 = arith.constant 52 : index
    %c0_17 = arith.constant 0 : index
    %13 = vector.load %arg7[%c52, %c0_17] : memref<72x512xf32, #tpu.memory_space<vmem>>, vector<4x512xf32>
    tpu.vector_store %arg7[%c52, %c0_17], %6 {strides = array<i32>} : memref<72x512xf32, #tpu.memory_space<vmem>>, vector<4x512xf32>,
    %c60 = arith.constant 60 : index
    %c0_18 = arith.constant 0 : index
    %14 = vector.load %arg7[%c60, %c0_18] : memref<72x512xf32, #tpu.memory_space<vmem>>, vector<4x512xf32>
    tpu.vector_store %arg7[%c60, %c0_18], %6 {strides = array<i32>} : memref<72x512xf32, #tpu.memory_space<vmem>>, vector<4x512xf32>,
    %c68 = arith.constant 68 : index
    %c0_19 = arith.constant 0 : index
    %15 = vector.load %arg7[%c68, %c0_19] : memref<72x512xf32, #tpu.memory_space<vmem>>, vector<4x512xf32>
    tpu.vector_store %arg7[%c68, %c0_19], %6 {strides = array<i32>} : memref<72x512xf32, #tpu.memory_space<vmem>>, vector<4x512xf32>,
    %c0_20 = arith.constant 0 : index
    %c0_21 = arith.constant 0 : index
    %16 = vector.load %arg4[%c0_20, %c0_21] : memref<2x256xf32, #tpu.memory_space<vmem>>, vector<1x256xf32>
    %c1 = arith.constant 1 : index
    %c0_22 = arith.constant 0 : index
    %17 = vector.load %arg4[%c1, %c0_22] : memref<2x256xf32, #tpu.memory_space<vmem>>, vector<1x256xf32>
    %c0_23 = arith.constant 0 : index
    %c0_24 = arith.constant 0 : index
    %c0_25 = arith.constant 0 : index
    %18 = vector.load %arg6[%c0_23, %c0_24, %c0_25] : memref<2x4x512xf32, #tpu.memory_space<vmem>>, vector<1x4x512xf32>
    %19 = vector.shape_cast %18 : vector<1x4x512xf32> to vector<4x512xf32>
    %20 = vector.extract_strided_slice %19 {offsets = [0, 111], sizes = [4, 256], strides = [1, 1]} : vector<4x512xf32> to vector<4x256xf32>
    %21 = vector.broadcast %16 : vector<1x256xf32> to vector<4x256xf32>
    %22 = arith.mulf %20, %21 : vector<4x256xf32>
    %c0_26 = arith.constant 0 : index
    %c0_27 = arith.constant 0 : index
    %23 = vector.load %arg7[%c0_26, %c0_27] : memref<72x512xf32, #tpu.memory_space<vmem>>, vector<4x256xf32>
    tpu.vector_store %arg7[%c0_26, %c0_27], %22 {strides = array<i32>} : memref<72x512xf32, #tpu.memory_space<vmem>>, vector<4x256xf32>,
    %24 = vector.extract_strided_slice %19 {offsets = [0, 112], sizes = [4, 256], strides = [1, 1]} : vector<4x512xf32> to vector<4x256xf32>
    %c8 = arith.constant 8 : index
    %c0_28 = arith.constant 0 : index
    %25 = vector.load %arg7[%c8, %c0_28] : memref<72x512xf32, #tpu.memory_space<vmem>>, vector<4x256xf32>
    tpu.vector_store %arg7[%c8, %c0_28], %24 {strides = array<i32>} : memref<72x512xf32, #tpu.memory_space<vmem>>, vector<4x256xf32>,
    %26 = vector.extract_strided_slice %19 {offsets = [0, 113], sizes = [4, 256], strides = [1, 1]} : vector<4x512xf32> to vector<4x256xf32>
    %27 = vector.broadcast %17 : vector<1x256xf32> to vector<4x256xf32>
    %28 = arith.mulf %26, %27 : vector<4x256xf32>
    %c16 = arith.constant 16 : index
    %c0_29 = arith.constant 0 : index
    %29 = vector.load %arg7[%c16, %c0_29] : memref<72x512xf32, #tpu.memory_space<vmem>>, vector<4x256xf32>
    tpu.vector_store %arg7[%c16, %c0_29], %28 {strides = array<i32>} : memref<72x512xf32, #tpu.memory_space<vmem>>, vector<4x256xf32>,
    %30 = vector.extract_strided_slice %19 {offsets = [0, 127], sizes = [4, 256], strides = [1, 1]} : vector<4x512xf32> to vector<4x256xf32>
    %31 = vector.broadcast %16 : vector<1x256xf32> to vector<4x256xf32>
    %32 = arith.mulf %30, %31 : vector<4x256xf32>
    %c24 = arith.constant 24 : index
    %c0_30 = arith.constant 0 : index
    %33 = vector.load %arg7[%c24, %c0_30] : memref<72x512xf32, #tpu.memory_space<vmem>>, vector<4x256xf32>
    tpu.vector_store %arg7[%c24, %c0_30], %32 {strides = array<i32>} : memref<72x512xf32, #tpu.memory_space<vmem>>, vector<4x256xf32>,
    %34 = vector.extract_strided_slice %19 {offsets = [0, 128], sizes = [4, 256], strides = [1, 1]} : vector<4x512xf32> to vector<4x256xf32>
    %c32 = arith.constant 32 : index
    %c0_31 = arith.constant 0 : index
    %35 = vector.load %arg7[%c32, %c0_31] : memref<72x512xf32, #tpu.memory_space<vmem>>, vector<4x256xf32>
    tpu.vector_store %arg7[%c32, %c0_31], %34 {strides = array<i32>} : memref<72x512xf32, #tpu.memory_space<vmem>>, vector<4x256xf32>,
    %36 = vector.extract_strided_slice %19 {offsets = [0, 129], sizes = [4, 256], strides = [1, 1]} : vector<4x512xf32> to vector<4x256xf32>
    %37 = vector.broadcast %17 : vector<1x256xf32> to vector<4x256xf32>
    %38 = arith.mulf %36, %37 : vector<4x256xf32>
    %c40 = arith.constant 40 : index
    %c0_32 = arith.constant 0 : index
    %39 = vector.load %arg7[%c40, %c0_32] : memref<72x512xf32, #tpu.memory_space<vmem>>, vector<4x256xf32>
    tpu.vector_store %arg7[%c40, %c0_32], %38 {strides = array<i32>} : memref<72x512xf32, #tpu.memory_space<vmem>>, vector<4x256xf32>,
    %40 = vector.extract_strided_slice %19 {offsets = [0, 143], sizes = [4, 256], strides = [1, 1]} : vector<4x512xf32> to vector<4x256xf32>
    %41 = vector.broadcast %16 : vector<1x256xf32> to vector<4x256xf32>
    %42 = arith.mulf %40, %41 : vector<4x256xf32>
    %c48 = arith.constant 48 : index
    %c0_33 = arith.constant 0 : index
    %43 = vector.load %arg7[%c48, %c0_33] : memref<72x512xf32, #tpu.memory_space<vmem>>, vector<4x256xf32>
    tpu.vector_store %arg7[%c48, %c0_33], %42 {strides = array<i32>} : memref<72x512xf32, #tpu.memory_space<vmem>>, vector<4x256xf32>,
    %44 = vector.extract_strided_slice %19 {offsets = [0, 144], sizes = [4, 256], strides = [1, 1]} : vector<4x512xf32> to vector<4x256xf32>
    %c56 = arith.constant 56 : index
    %c0_34 = arith.constant 0 : index
    %45 = vector.load %arg7[%c56, %c0_34] : memref<72x512xf32, #tpu.memory_space<vmem>>, vector<4x256xf32>
    tpu.vector_store %arg7[%c56, %c0_34], %44 {strides = array<i32>} : memref<72x512xf32, #tpu.memory_space<vmem>>, vector<4x256xf32>,
    %46 = vector.extract_strided_slice %19 {offsets = [0, 145], sizes = [4, 256], strides = [1, 1]} : vector<4x512xf32> to vector<4x256xf32>
    %47 = vector.broadcast %17 : vector<1x256xf32> to vector<4x256xf32>
    %48 = arith.mulf %46, %47 : vector<4x256xf32>
    %c64 = arith.constant 64 : index
    %c0_35 = arith.constant 0 : index
    %49 = vector.load %arg7[%c64, %c0_35] : memref<72x512xf32, #tpu.memory_space<vmem>>, vector<4x256xf32>
    tpu.vector_store %arg7[%c64, %c0_35], %48 {strides = array<i32>} : memref<72x512xf32, #tpu.memory_space<vmem>>, vector<4x256xf32>,
    %c1_36 = arith.constant 1 : index
    %c0_37 = arith.constant 0 : index
    %c0_38 = arith.constant 0 : index
    %50 = vector.load %arg6[%c1_36, %c0_37, %c0_38] : memref<2x4x512xf32, #tpu.memory_space<vmem>>, vector<1x4x512xf32>
    %51 = vector.shape_cast %50 : vector<1x4x512xf32> to vector<4x512xf32>
    %52 = vector.extract_strided_slice %51 {offsets = [0, 111], sizes = [4, 256], strides = [1, 1]} : vector<4x512xf32> to vector<4x256xf32>
    %53 = vector.broadcast %16 : vector<1x256xf32> to vector<4x256xf32>
    %54 = arith.mulf %52, %53 : vector<4x256xf32>
    %c0_39 = arith.constant 0 : index
    %c256 = arith.constant 256 : index
    %55 = vector.load %arg7[%c0_39, %c256] : memref<72x512xf32, #tpu.memory_space<vmem>>, vector<4x256xf32>
    tpu.vector_store %arg7[%c0_39, %c256], %54 {strides = array<i32>} : memref<72x512xf32, #tpu.memory_space<vmem>>, vector<4x256xf32>,
    %56 = vector.extract_strided_slice %51 {offsets = [0, 112], sizes = [4, 256], strides = [1, 1]} : vector<4x512xf32> to vector<4x256xf32>
    %c8_40 = arith.constant 8 : index
    %c256_41 = arith.constant 256 : index
    %57 = vector.load %arg7[%c8_40, %c256_41] : memref<72x512xf32, #tpu.memory_space<vmem>>, vector<4x256xf32>
    tpu.vector_store %arg7[%c8_40, %c256_41], %56 {strides = array<i32>} : memref<72x512xf32, #tpu.memory_space<vmem>>, vector<4x256xf32>,
    %58 = vector.extract_strided_slice %51 {offsets = [0, 113], sizes = [4, 256], strides = [1, 1]} : vector<4x512xf32> to vector<4x256xf32>
    %59 = vector.broadcast %17 : vector<1x256xf32> to vector<4x256xf32>
    %60 = arith.mulf %58, %59 : vector<4x256xf32>
    %c16_42 = arith.constant 16 : index
    %c256_43 = arith.constant 256 : index
    %61 = vector.load %arg7[%c16_42, %c256_43] : memref<72x512xf32, #tpu.memory_space<vmem>>, vector<4x256xf32>
    tpu.vector_store %arg7[%c16_42, %c256_43], %60 {strides = array<i32>} : memref<72x512xf32, #tpu.memory_space<vmem>>, vector<4x256xf32>,
    %62 = vector.extract_strided_slice %51 {offsets = [0, 127], sizes = [4, 256], strides = [1, 1]} : vector<4x512xf32> to vector<4x256xf32>
    %63 = vector.broadcast %16 : vector<1x256xf32> to vector<4x256xf32>
    %64 = arith.mulf %62, %63 : vector<4x256xf32>
    %c24_44 = arith.constant 24 : index
    %c256_45 = arith.constant 256 : index
    %65 = vector.load %arg7[%c24_44, %c256_45] : memref<72x512xf32, #tpu.memory_space<vmem>>, vector<4x256xf32>
    tpu.vector_store %arg7[%c24_44, %c256_45], %64 {strides = array<i32>} : memref<72x512xf32, #tpu.memory_space<vmem>>, vector<4x256xf32>,
    %66 = vector.extract_strided_slice %51 {offsets = [0, 128], sizes = [4, 256], strides = [1, 1]} : vector<4x512xf32> to vector<4x256xf32>
    %c32_46 = arith.constant 32 : index
    %c256_47 = arith.constant 256 : index
    %67 = vector.load %arg7[%c32_46, %c256_47] : memref<72x512xf32, #tpu.memory_space<vmem>>, vector<4x256xf32>
    tpu.vector_store %arg7[%c32_46, %c256_47], %66 {strides = array<i32>} : memref<72x512xf32, #tpu.memory_space<vmem>>, vector<4x256xf32>,
    %68 = vector.extract_strided_slice %51 {offsets = [0, 129], sizes = [4, 256], strides = [1, 1]} : vector<4x512xf32> to vector<4x256xf32>
    %69 = vector.broadcast %17 : vector<1x256xf32> to vector<4x256xf32>
    %70 = arith.mulf %68, %69 : vector<4x256xf32>
    %c40_48 = arith.constant 40 : index
    %c256_49 = arith.constant 256 : index
    %71 = vector.load %arg7[%c40_48, %c256_49] : memref<72x512xf32, #tpu.memory_space<vmem>>, vector<4x256xf32>
    tpu.vector_store %arg7[%c40_48, %c256_49], %70 {strides = array<i32>} : memref<72x512xf32, #tpu.memory_space<vmem>>, vector<4x256xf32>,
    %72 = vector.extract_strided_slice %51 {offsets = [0, 143], sizes = [4, 256], strides = [1, 1]} : vector<4x512xf32> to vector<4x256xf32>
    %73 = vector.broadcast %16 : vector<1x256xf32> to vector<4x256xf32>
    %74 = arith.mulf %72, %73 : vector<4x256xf32>
    %c48_50 = arith.constant 48 : index
    %c256_51 = arith.constant 256 : index
    %75 = vector.load %arg7[%c48_50, %c256_51] : memref<72x512xf32, #tpu.memory_space<vmem>>, vector<4x256xf32>
    tpu.vector_store %arg7[%c48_50, %c256_51], %74 {strides = array<i32>} : memref<72x512xf32, #tpu.memory_space<vmem>>, vector<4x256xf32>,
    %76 = vector.extract_strided_slice %51 {offsets = [0, 144], sizes = [4, 256], strides = [1, 1]} : vector<4x512xf32> to vector<4x256xf32>
    %c56_52 = arith.constant 56 : index
    %c256_53 = arith.constant 256 : index
    %77 = vector.load %arg7[%c56_52, %c256_53] : memref<72x512xf32, #tpu.memory_space<vmem>>, vector<4x256xf32>
    tpu.vector_store %arg7[%c56_52, %c256_53], %76 {strides = array<i32>} : memref<72x512xf32, #tpu.memory_space<vmem>>, vector<4x256xf32>,
    %78 = vector.extract_strided_slice %51 {offsets = [0, 145], sizes = [4, 256], strides = [1, 1]} : vector<4x512xf32> to vector<4x256xf32>
    %79 = vector.broadcast %17 : vector<1x256xf32> to vector<4x256xf32>
    %80 = arith.mulf %78, %79 : vector<4x256xf32>
    %c64_54 = arith.constant 64 : index
    %c256_55 = arith.constant 256 : index
    %81 = vector.load %arg7[%c64_54, %c256_55] : memref<72x512xf32, #tpu.memory_space<vmem>>, vector<4x256xf32>
    tpu.vector_store %arg7[%c64_54, %c256_55], %80 {strides = array<i32>} : memref<72x512xf32, #tpu.memory_space<vmem>>, vector<4x256xf32>,
    %c0_56 = arith.constant 0 : index
    %c0_57 = arith.constant 0 : index
    %82 = vector.load %arg2[%c0_56, %c0_57] : memref<8x72xf32, #tpu.memory_space<vmem>>, vector<8x72xf32>
    %c0_58 = arith.constant 0 : index
    %c0_59 = arith.constant 0 : index
    %83 = vector.load %arg7[%c0_58, %c0_59] : memref<72x512xf32, #tpu.memory_space<vmem>>, vector<72x512xf32>
    %cst_60 = arith.constant dense<0.000000e+00> : vector<8x512xf32>
    %84 = tpu.matmul %82, %83, %cst_60 {dimension_numbers = #tpu.dot_dimension_numbers<[1], [0], [0], [1], [0, 0, 1, 1], [], []>} : vector<8x72xf32>, vector<72x512xf32>, vector<8x512xf32> -> vector<8x512xf32>
    %c0_61 = arith.constant 0 : index
    %c0_62 = arith.constant 0 : index
    %85 = vector.load %arg3[%c0_61, %c0_62] : memref<8x1xf32, #tpu.memory_space<vmem>>, vector<8x1xf32>
    %86 = vector.broadcast %85 : vector<8x1xf32> to vector<8x512xf32>
    %87 = arith.addf %84, %86 : vector<8x512xf32>
    %88 = vector.extract_strided_slice %87 {offsets = [0, 0], sizes = [8, 256], strides = [1, 1]} : vector<8x512xf32> to vector<8x256xf32>
    %c0_63 = arith.constant 0 : index
    %c0_64 = arith.constant 0 : index
    %c0_65 = arith.constant 0 : index
    %89 = vector.load %arg5[%c0_63, %c0_64, %c0_65] : memref<2x8x256xf32, #tpu.memory_space<vmem>>, vector<1x8x256xf32>
    %90 = vector.shape_cast %89 : vector<1x8x256xf32> to vector<8x256xf32>
    %91 = vector.shape_cast %88 : vector<8x256xf32> to vector<1x8x256xf32>
    tpu.vector_store %arg5[%c0_63, %c0_64, %c0_65], %91 {strides = array<i32>} : memref<2x8x256xf32, #tpu.memory_space<vmem>>, vector<1x8x256xf32>,
    %92 = vector.extract_strided_slice %87 {offsets = [0, 256], sizes = [8, 256], strides = [1, 1]} : vector<8x512xf32> to vector<8x256xf32>
    %c1_66 = arith.constant 1 : index
    %c0_67 = arith.constant 0 : index
    %c0_68 = arith.constant 0 : index
    %93 = vector.load %arg5[%c1_66, %c0_67, %c0_68] : memref<2x8x256xf32, #tpu.memory_space<vmem>>, vector<1x8x256xf32>
    %94 = vector.shape_cast %93 : vector<1x8x256xf32> to vector<8x256xf32>
    %95 = vector.shape_cast %92 : vector<8x256xf32> to vector<1x8x256xf32>
    tpu.vector_store %arg5[%c1_66, %c0_67, %c0_68], %95 {strides = array<i32>} : memref<2x8x256xf32, #tpu.memory_space<vmem>>, vector<1x8x256xf32>,
    return
  }
  func.func @transform_0(%arg0: i32) -> (i32, i32, i32) {
    %c0_i32 = arith.constant 0 : i32
    %c0_i32_0 = arith.constant 0 : i32
    %c0_i32_1 = arith.constant 0 : i32
    return %arg0, %c0_i32, %c0_i32_0 : i32, i32, i32
  }
  func.func @transform_1(%arg0: i32) -> (i32, i32) {
    %c0_i32 = arith.constant 0 : i32
    %c0_i32_0 = arith.constant 0 : i32
    %c0_i32_1 = arith.constant 0 : i32
    return %c0_i32, %c0_i32_0 : i32, i32
  }
  func.func @transform_2(%arg0: i32) -> (i32, i32) {
    %c0_i32 = arith.constant 0 : i32
    %c0_i32_0 = arith.constant 0 : i32
    %c0_i32_1 = arith.constant 0 : i32
    return %c0_i32, %c0_i32_0 : i32, i32
  }
  func.func @transform_3(%arg0: i32) -> (i32, i32) {
    %c0_i32 = arith.constant 0 : i32
    %c0_i32_0 = arith.constant 0 : i32
    %c0_i32_1 = arith.constant 0 : i32
    return %c0_i32, %c0_i32_0 : i32, i32
  }
  func.func @transform_4(%arg0: i32) -> (i32, i32, i32) {
    %c0_i32 = arith.constant 0 : i32
    %c0_i32_0 = arith.constant 0 : i32
    %c0_i32_1 = arith.constant 0 : i32
    return %arg0, %c0_i32, %c0_i32_0 : i32, i32, i32
  }
}

</mosaic_0001>

<bundles_post_ra>
// kernel: tpu_custom_call.1
= control target key start
LH: loop header
LB: loop body
LE: loop exit
PB: predicated region body
PF: predicated region fallthrough
CT: control target
= control target key end

     0   :  { %9 = vsyncpa [#allocation5], 0  ;;  %s1018_s0 = inlined_call_operand.hbm [shape: f32[2,4,256], index: 0, kind: input, shape index: {}]   ;;  %s1019_s1 = inlined_call_operand.vmem [shape: f32[8,72], index: 1, kind: input, shape index: {}]   ;;  %s1020_s2 = inlined_call_operand.vmem [shape: f32[8,1], index: 2, kind: input, shape index: {}]   ;;  %s1021_s3 = inlined_call_operand.hbm [shape: f32[2,256], index: 3, kind: input, shape index: {}]   ;;  %s1022_s4 = inlined_call_operand.hbm [shape: f32[2,8,256], index: 4, kind: output, shape index: {}]  }
   0x1   :  { %10 = vsyncpa [#allocation8], 0 }
   0x2   :  { %11 = vsyncpa [#allocation6], 0  ;;  %s16_s17 = sshll.u32 %s1018_s0, 4  ;;  %s724_s18 = smov [#allocation4]   ;;  %s17_s17 = int_to_ptr.hbm [resolvable:$true] %s16_s17 }
   0x3   :  { %s18_s19 = sshll.u32 %s724_s18, 4  ;;  %s34_s22 = sshll.u32 %s1021_s3, 4  ;;  %s19_s19 = int_to_ptr.vmem [resolvable:$true] %s18_s19  ;;  %s35_s22 = int_to_ptr.hbm [resolvable:$true] %s34_s22 }
   0x4   :  { %s725_s23 = smov 128   ;;  %s726_s24 = smov 8  }
   0x5   :  { %24 = dma.hbm_to_vmem [thread:$0]  %s17_s17, 256, %s19_s19, [#allocation5], %s725_s23, %s725_s23, %s726_s24  }
   0x6   :  { %s727_s25 = smov [#allocation7]  }
   0x7   :  { %s36_s26 = sshll.u32 %s727_s25, 4  ;;  %s37_s26 = int_to_ptr.vmem [resolvable:$true] %s36_s26 }
   0x8   :  { %39 = dma.hbm_to_vmem [thread:$0]  %s35_s22, 64, %s37_s26, [#allocation8]  }
   0x9   :  { %718 = dma.done.wait [#allocation5], 256  }
   0xa   :  { %719 = vsyncadd [#allocation5], 4294967040 }
   0xb   :  { %720 = dma.done.wait [#allocation8], 64  }
   0xc   :  { %721 = vsyncadd [#allocation8], 4294967232  ;;  %v728_v0 = vmov 0.0   ;;  %v92_v1 = vld [vmem:[#allocation7] ss:$2 sm:$0x3] }
   0xd   :  { %48 = vst [vmem:[#allocation2] sm:$0xf] %v728_v0  ;;  %v94_v2 = vld [vmem:[#allocation7 + $0x1] ss:$2 sm:$0x3]  ;;  %v98_v3 = vperm.slane %v92_v1, 0 }
   0xe   :  { %49 = vst [vmem:[#allocation2 + $0x10] sm:$0xf] %v728_v0  ;;  %v99_v4 = vperm.slane %v92_v1, 1  ;;  %v52_v5 = vld [vmem:[#allocation4] sm:$0xff]  ;;  %vm101_vm0 = vcmask 1043456   ;;  %v156_v7 = vperm.slane %v94_v2, 1 }
   0xf   :  { %50 = vst [vmem:[#allocation2 + $0xc] sm:$0xf] %v728_v0  ;;  %s729_s0 = smov 111   ;;  %s730_s3 = smov 127   ;;  %v155_v9 = vperm.slane %v94_v2, 0  ;;  %v53_v14 = vld [vmem:[#allocation4 + $0x8] sm:$0xff] }
  0x10   :  { %51 = vst [vmem:[#allocation2 + $0x1c] sm:$0xf] %v728_v0  ;;  %v100_v6 = vrot.slane %v99_v4, 4  ;;  %v157_v10 = vrot.slane %v156_v7, 4  ;;  %s731_s27 = smov 113   ;;  %vm106_vm1 = vcmask 908288  }
  0x11   :  { %56 = vst [vmem:[#allocation3 + $0xb0] sm:$0xf0] %v728_v0  ;;  %vm162_vm2 = vcmask 924672   ;;  %vm192_vm3 = vcmask 1039360   ;;  %s732_s28 = smov 1   ;;  %s733_s29 = smov 112  }
  0x12   :  { %57 = vst [vmem:[#allocation3 + $0xd0] sm:$0xf0] %v728_v0  ;;  %v780_v8 = vsel %vm101_vm0, %v98_v3, %v100_v6  ;;  %v797_v12 = vsel %vm101_vm0, %v155_v9, %v157_v10  ;;  %s734_s30 = smov 17   ;;  %s735_s5 = smov 16   ;;  %vm212_vm4 = vcmask 7168   ;;  %vm278_vm5 = vcmask 916480  }
  0x13   :  { %54 = vst [vmem:[#allocation2 + $0x4] sm:$0xff] %v52_v5  ;;  %103 = vrot.lane.b32.xlu0 %v780_v8, %s729_s0  ;;  %189 = vrot.lane.b32.xlu1 %v780_v8, %s730_s3  ;;  %s736_s6 = smov 15   ;;  %vm126_vm6 = vcmask 138240   ;;  %vm147_vm7 = vcmask 130048   ;;  %vm182_vm8 = vcmask 121856   ;;  %vm516_vm9 = vcmask 588800  }
  0x14   :  { %58 = vst [vmem:[#allocation3 + $0x10] sm:$0xf0] %v728_v0  ;;  %s611_s11 = sshll.u32 %s1022_s4, 4  ;;  %s738_s12 = smov [#allocation9]   ;;  %s612_s11 = int_to_ptr.hbm [resolvable:$true] %s611_s11 }
  0x15   :  { %59 = vst [vmem:[#allocation3 + $0x48] sm:$0xf0] %v728_v0  ;;  %s609_s13 = sshll.u32 %s738_s12, 4  ;;  %s739_s14 = smov 256   ;;  %s610_s13 = int_to_ptr.vmem [resolvable:$true] %s609_s13 }
  0x16   :  { %60 = vst [vmem:[#allocation3 + $0x108] sm:$0xf0] %v728_v0 }
  0x17   :  { %61 = vst [vmem:[#allocation3 + $0x68] sm:$0xf0] %v728_v0 }
  0x18   :  { %62 = vst [vmem:[#allocation3 + $0x30] sm:$0xf0] %v728_v0 }
  0x19   :  { %63 = vst [vmem:[#allocation3 + $0x18] sm:$0xf0] %v728_v0 }
  0x1a   :  { %64 = vst [vmem:[#allocation3 + $0x80] sm:$0xf0] %v728_v0  ;;  %v791_v11 = vld [vmem:[#allocation2 + $0x8] sm:$0xff]  ;;  %v799_v13 = vld [vmem:[#allocation2] sm:$0xff] }
  0x1b   :  { %65 = vst [vmem:[#allocation3 + $0x110] sm:$0xf0] %v728_v0  ;;  %230 = vrot.lane.b32.xlu2 %v791_v11, %s730_s3  ;;  %159 = vrot.lane.b32.xlu0 %v797_v12, %s731_s27 }
  0x1c   :  { %66 = vst [vmem:[#allocation3 + $0x118] sm:$0xf0] %v728_v0  ;;  %228 = vrot.lane.b32.xlu1 %v799_v13, %s730_s3 }
  0x1d   :  { %67 = vst [vmem:[#allocation3 + $0x98] sm:$0xf0] %v728_v0 }
  0x1e   :  { %68 = vst [vmem:[#allocation3 + $0xf8] sm:$0xf0] %v728_v0 }
  0x1f   :  { %69 = vst [vmem:[#allocation3 + $0x38] sm:$0xf0] %v728_v0 }
  0x20   :  { %70 = vst [vmem:[#allocation3 + $0x8] sm:$0xf0] %v728_v0 }
  0x21   :  { %71 = vst [vmem:[#allocation3 + $0x78] sm:$0xf0] %v728_v0 }
  0x22   :  { %72 = vst [vmem:[#allocation3 + $0x20] sm:$0xf0] %v728_v0 }
  0x23   :  { %73 = vst [vmem:[#allocation3 + $0xc8] sm:$0xf0] %v728_v0  ;;  %247 = vrot.lane.b32.xlu2 %v799_v13, %s731_s27  ;;  %249 = vrot.lane.b32.xlu0 %v791_v11, %s731_s27 }
  0x24   :  { %74 = vst [vmem:[#allocation3 + $0x90] sm:$0xf0] %v728_v0  ;;  %285 = vrot.lane.b32.xlu1 %v799_v13, %s729_s0 }
  0x25   :  { %75 = vst [vmem:[#allocation3 + $0xa0] sm:$0xf0] %v728_v0 }
  0x26   :  { %76 = vst [vmem:[#allocation3 + $0x70] sm:$0xf0] %v728_v0 }
  0x27   :  { %77 = vst [vmem:[#allocation3 + $0x58] sm:$0xf0] %v728_v0 }
  0x28   :  { %78 = vst [vmem:[#allocation3 + $0xe0] sm:$0xf0] %v728_v0 }
  0x29   :  { %79 = vst [vmem:[#allocation3 + $0x60] sm:$0xf0] %v728_v0 }
  0x2a   :  { %80 = vst [vmem:[#allocation3 + $0xa8] sm:$0xf0] %v728_v0 }
  0x2b   :  { %81 = vst [vmem:[#allocation3 + $0x88] sm:$0xf0] %v728_v0  ;;  %287 = vrot.lane.b32.xlu2 %v791_v11, %s729_s0 }
  0x2c   :  { %82 = vst [vmem:[#allocation3 + $0xd8] sm:$0xf0] %v728_v0 }
  0x2d   :  { %83 = vst [vmem:[#allocation3 + $0xc0] sm:$0xf0] %v728_v0 }
  0x2e   :  { %84 = vst [vmem:[#allocation3 + $0x50] sm:$0xf0] %v728_v0 }
  0x2f   :  { %85 = vst [vmem:[#allocation3 + $0xf0] sm:$0xf0] %v728_v0 }
  0x30   :  { %86 = vst [vmem:[#allocation3 + $0xb8] sm:$0xf0] %v728_v0 }
  0x31   :  { %87 = vst [vmem:[#allocation3 + $0x28] sm:$0xf0] %v728_v0 }
  0x32   :  { %88 = vst [vmem:[#allocation3 + $0x100] sm:$0xf0] %v728_v0 }
  0x33   :  { %89 = vst [vmem:[#allocation3] sm:$0xf0] %v728_v0 }
  0x34   :  { %90 = vst [vmem:[#allocation3 + $0x40] sm:$0xf0] %v728_v0 }
  0x35   :  { %91 = vst [vmem:[#allocation3 + $0xe8] sm:$0xf0] %v728_v0 }
  0x36   :  { %55 = vst [vmem:[#allocation2 + $0x14] sm:$0xff] %v53_v14 }
  0x3d   :  { %v839_v15 = vld [vmem:[#allocation2 + $0x10] sm:$0xff]  ;;  %v841_v16 = vld [vmem:[#allocation2 + $0x18] sm:$0xff] }
  0x3e   :  { %401 = vrot.lane.b32.xlu0 %v839_v15, %s730_s3  ;;  %403 = vrot.lane.b32.xlu1 %v841_v16, %s730_s3 }
  0x3f   :  { %419 = vrot.lane.b32.xlu2 %v839_v15, %s731_s27 }
  0x46   :  { %421 = vrot.lane.b32.xlu0 %v841_v16, %s731_s27  ;;  %455 = vrot.lane.b32.xlu1 %v839_v15, %s729_s0 }
  0x47   :  { %457 = vrot.lane.b32.xlu2 %v841_v16, %s729_s0 }
  0x75   :  { %v231_v41 = vpop.permute.xlu2 %230 }
  0x76   :  { %v233_v43 = vrot.slane %v231_v41, 4 }
  0x7d   :  { %v248_v51 = vpop.permute.xlu2 %247 }
  0x7e   :  { %v251_v54 = vrot.slane %v248_v51, 4 }
  0x85   :  { %v104_v17 = vpop.permute.xlu0 %103  ;;  %v190_v28 = vpop.permute.xlu1 %189 }
  0x86   :  { %v855_v18 = vrot.slane %v104_v17, 4  ;;  %v883_v31 = vrot.slane %v190_v28, 4  ;;  %v288_v1 = vpop.permute.xlu2 %287 }
  0x87   :  { %v290_v3 = vrot.slane %v288_v1, 4 }
  0x88   :  { %v859_v19 = vsel %vm106_vm1, %v855_v18, %v104_v17  ;;  %v111_v20 = vmul.f32 %v855_v18, %v791_v11  ;;  %v893_v35 = vsel %vm192_vm3, %v883_v31, %v190_v28  ;;  %v197_v36 = vmul.f32 %v883_v31, %v791_v11 }
  0x89   :  { %v110_v21 = vmul.f32 %v859_v19, %v799_v13  ;;  %v196_v37 = vmul.f32 %v893_v35, %v799_v13  ;;  %v307_v63 = vmul.f32 %v841_v16, %v855_v18  ;;  %v306_v28 = vmul.f32 %v839_v15, %v859_v19 }
  0x8a   :  { %116 = vst [vmem:[#allocation1 + $0x10] ss:$2 sm:$0xff] %v111_v20 }
  0x8b   :  { %114 = vst [vmem:[#allocation1] ss:$2 sm:$0xff] %v110_v21 }
  0x8d   :  { %v160_v22 = vpop.permute.xlu0 %159 }
  0x8e   :  { %v867_v24 = vrot.slane %v160_v22, 4  ;;  %v229_v42 = vpop.permute.xlu1 %228 }
  0x8f   :  { %v232_v44 = vrot.slane %v229_v42, 4 }
  0x90   :  { %v877_v27 = vsel %vm162_vm2, %v867_v24, %v160_v22  ;;  %v167_v29 = vmul.f32 %v867_v24, %v791_v11  ;;  %v349_v14 = vmul.f32 %v841_v16, %v867_v24 }
  0x91   :  { %v865_v23 = vld.sshfl [vmem:[#allocation1 + $0x10] sm:$0xff pattern:$0x75316420]  ;;  %v166_v30 = vmul.f32 %v877_v27, %v799_v13  ;;  %v234_v47 = vsel %vm101_vm0, %v232_v44, %v233_v43 }
  0x92   :  { %v869_v25 = vld.sshfl [vmem:[#allocation1] sm:$0xff pattern:$0x75316420]  ;;  %v871_v26 = vld.sshfl [vmem:[#allocation1 + $0x8] sm:$0xff pattern:$0x75316420]  ;;  %v235_v49 = vsel %vm192_vm3, %v234_v47, %v231_v41 }
  0x93   :  { %135 = vst [vmem:[#allocation1] ss:$2 sm:$0xff] %v799_v13  ;;  %v238_v52 = vmul.f32 %v235_v49, %v797_v12 }
  0x94   :  { %137 = vst [vmem:[#allocation1 + $0x10] ss:$2 sm:$0xff] %v791_v11 }
  0x95   :  { %v250_v50 = vpop.permute.xlu0 %249 }
  0x96   :  { %v252_v53 = vrot.slane %v250_v50, 4  ;;  %v286_v2 = vpop.permute.xlu1 %285 }
  0x97   :  { %v289_v4 = vrot.slane %v286_v2, 4 }
  0x98   :  { %v253_v57 = vsel %vm101_vm0, %v251_v54, %v252_v53 }
  0x99   :  { %v254_v58 = vsel %vm162_vm2, %v253_v57, %v250_v50  ;;  %v291_v7 = vsel %vm101_vm0, %v289_v4, %v290_v3  ;;  %v420_v54 = vpop.permute.xlu2 %419 }
  0x9a   :  { %v885_v32 = vld.sshfl [vmem:[#allocation1] sm:$0xff pattern:$0x75316420]  ;;  %v887_v33 = vld.sshfl [vmem:[#allocation1 + $0x8] sm:$0xff pattern:$0x75316420]  ;;  %v257_v61 = vmul.f32 %v254_v58, %v780_v8  ;;  %v292_v10 = vsel %vm106_vm1, %v291_v7, %v288_v1 }
  0x9b   :  { %v889_v34 = vld.sshfl [vmem:[#allocation1 + $0x10] sm:$0xff pattern:$0x75316420]  ;;  %170 = vst [vmem:[#allocation1] ss:$2 sm:$0xff] %v166_v30 }
  0x9c   :  { %172 = vst [vmem:[#allocation1 + $0x10] ss:$2 sm:$0xff] %v167_v29 }
  0xa2   :  { %v899_v38 = vld.sshfl [vmem:[#allocation1] sm:$0xff pattern:$0x75316420]  ;;  %v901_v39 = vld.sshfl [vmem:[#allocation1 + $0x8] sm:$0xff pattern:$0x75316420] }
  0xa3   :  { %v903_v40 = vld.sshfl [vmem:[#allocation1 + $0x10] sm:$0xff pattern:$0x75316420]  ;;  %200 = vst [vmem:[#allocation1] ss:$2 sm:$0xff] %v196_v37  ;;  %v348_v37 = vmul.f32 %v839_v15, %v877_v27 }
  0xa4   :  { %202 = vst [vmem:[#allocation1 + $0x10] ss:$2 sm:$0xff] %v197_v36 }
  0xaa   :  { %v204_v45 = vld.sshfl [vmem:[#allocation1 + $0x8] sm:$0xff pattern:$0x75316420]  ;;  %v203_v46 = vld.sshfl [vmem:[#allocation1] sm:$0xff pattern:$0x75316420] }
  0xab   :  { %v205_v48 = vld.sshfl [vmem:[#allocation1 + $0x10] sm:$0xff pattern:$0x75316420]  ;;  %208 = vrot.lane.b32.xlu1 %v204_v45, %s732_s28  ;;  %206 = vrot.lane.b32.xlu0 %v203_v46, %s732_s28  ;;  %219 = vst [vmem:[#allocation1] ss:$2 sm:$0xff] %v799_v13  ;;  %v370_v45 = vmul.f32 %v839_v15, %v893_v35 }
  0xac   :  { %221 = vst [vmem:[#allocation1 + $0x10] ss:$2 sm:$0xff] %v791_v11  ;;  %210 = vrot.lane.b32.xlu2 %v205_v48, %s732_s28 }
  0xb0   :  { %v402_v27 = vpop.permute.xlu0 %401 }
  0xb1   :  { %v405_v48 = vrot.slane %v402_v27, 4 }
  0xb2   :  { %v222_v55 = vld.sshfl [vmem:[#allocation1 + $0x8] sm:$0xff pattern:$0x75316420] }
  0xb3   :  { %v223_v56 = vld.sshfl [vmem:[#allocation1 + $0x10] sm:$0xff pattern:$0x75316420]  ;;  %240 = vst [vmem:[#allocation1] ss:$2 sm:$0xff] %v238_v52 }
  0xb4   :  { %268 = vst [vmem:[#allocation1 + $0x10] ss:$2 sm:$0xff] %v791_v11  ;;  %v294_v11 = vmul.f32 %v292_v10, %v797_v12 }
  0xb5   :  { %227 = vst [vmem:[#allocation3 + $0xc8] sm:$0xf] %v223_v56 }
  0xb6   :  { %226 = vst [vmem:[#allocation3 + $0x20] sm:$0xf] %v222_v55  ;;  %v423_v55 = vrot.slane %v420_v54, 4 }
  0xb8   :  { %v422_v52 = vpop.permute.xlu0 %421 }
  0xb9   :  { %v424_v56 = vrot.slane %v422_v52, 4 }
  0xba   :  { %v241_v59 = vld.sshfl [vmem:[#allocation1] sm:$0xff pattern:$0x75316420]  ;;  %v242_v60 = vld.sshfl [vmem:[#allocation1 + $0x8] sm:$0xff pattern:$0x75316420] }
  0xbb   :  { %245 = vst [vmem:[#allocation3 + $0x70] sm:$0xf] %v241_v59  ;;  %v271_v62 = vld.sshfl [vmem:[#allocation1 + $0x18] sm:$0xff pattern:$0x75316420]  ;;  %v425_v58 = vsel %vm101_vm0, %v423_v55, %v424_v56 }
  0xbc   :  { %246 = vst [vmem:[#allocation3 + $0x58] sm:$0xf] %v242_v60  ;;  %276 = vrot.lane.b32.xlu2 %v271_v62, %s733_s29  ;;  %v270_v0 = vld.sshfl [vmem:[#allocation1 + $0x10] sm:$0xff pattern:$0x75316420]  ;;  %v426_v59 = vsel %vm162_vm2, %v425_v58, %v422_v52 }
  0xbd   :  { %259 = vst [vmem:[#allocation1] ss:$2 sm:$0xff] %v257_v61  ;;  %274 = vrot.lane.b32.xlu1 %v270_v0, %s733_s29  ;;  %v428_v60 = vmul.f32 %v426_v59, %v780_v8 }
  0xbe   :  { %312 = vst [vmem:[#allocation1 + $0x10] ss:$2 sm:$0xff] %v307_v63 }
  0xc4   :  { %v260_v5 = vld.sshfl [vmem:[#allocation1] sm:$0xff pattern:$0x75316420]  ;;  %v261_v6 = vld.sshfl [vmem:[#allocation1 + $0x8] sm:$0xff pattern:$0x75316420] }
  0xc5   :  { %v315_v9 = vld.sshfl [vmem:[#allocation1 + $0x10] sm:$0xff pattern:$0x75316420]  ;;  %266 = vst [vmem:[#allocation1] ss:$2 sm:$0xff] %v799_v13  ;;  %v371_v13 = vmul.f32 %v841_v16, %v883_v31 }
  0xc6   :  { %320 = vrot.lane.b32.xlu2 %v315_v9, %s734_s30  ;;  %332 = vst [vmem:[#allocation1 + $0x10] ss:$2 sm:$0xff] %v841_v16 }
  0xc7   :  { %264 = vst [vmem:[#allocation3 + $0xa8] sm:$0xf] %v260_v5 }
  0xc8   :  { %265 = vst [vmem:[#allocation3 + $0x88] sm:$0xf] %v261_v6 }
  0xcc   :  { %v269_v17 = vld.sshfl [vmem:[#allocation1 + $0x8] sm:$0xff pattern:$0x75316420] }
  0xcd   :  { %v335_v18 = vld.sshfl [vmem:[#allocation1 + $0x10] sm:$0xff pattern:$0x75316420]  ;;  %272 = vrot.lane.b32.xlu0 %v269_v17, %s733_s29  ;;  %296 = vst [vmem:[#allocation1] ss:$2 sm:$0xff] %v294_v11  ;;  %v495_v17 = vld [vmem:[#allocation3 + $0x58] sm:$0xff] }
  0xce   :  { %340 = vrot.lane.b32.xlu2 %v335_v18, %s735_s5  ;;  %354 = vst [vmem:[#allocation1 + $0x10] ss:$2 sm:$0xff] %v349_v14  ;;  %v491_v18 = vld [vmem:[#allocation3 + $0xc8] sm:$0xff] }
  0xcf   :  { %v499_v11 = vld [vmem:[#allocation3 + $0x88] sm:$0xff] }
  0xd4   :  { %v297_v20 = vld.sshfl [vmem:[#allocation1] sm:$0xff pattern:$0x75316420]  ;;  %v298_v21 = vld.sshfl [vmem:[#allocation1 + $0x8] sm:$0xff pattern:$0x75316420] }
  0xd5   :  { %v357_v22 = vld.sshfl [vmem:[#allocation1 + $0x10] sm:$0xff pattern:$0x75316420]  ;;  %302 = vst [vmem:[#allocation3] sm:$0xf] %v298_v21 }
  0xd6   :  { %362 = vrot.lane.b32.xlu2 %v357_v22, %s736_s6  ;;  %376 = vst [vmem:[#allocation1 + $0x10] ss:$2 sm:$0xff] %v371_v13 }
  0xd7   :  { %301 = vst [vmem:[#allocation3 + $0x100] sm:$0xf] %v297_v20 }
  0xd8   :  { %310 = vst [vmem:[#allocation1] ss:$2 sm:$0xff] %v306_v28 }
  0xdc   :  { %v507_v24 = vld [vmem:[#allocation3] sm:$0xff] }
  0xdd   :  { %v379_v29 = vld.sshfl [vmem:[#allocation1 + $0x10] sm:$0xff pattern:$0x75316420]  ;;  %547 = vmatpush.msra.mxu1 %v507_v24 }
  0xde   :  { %394 = vst [vmem:[#allocation1 + $0x10] ss:$2 sm:$0xff] %v841_v16  ;;  %384 = vrot.lane.b32.xlu2 %v379_v29, %s732_s28  ;;  %v506_v30 = vld [vmem:[#allocation3 + $0x100] sm:$0xff]  ;;  %v498_v24 = vld [vmem:[#allocation3 + $0xa8] sm:$0xff] }
  0xdf   :  { %v314_v31 = vld.sshfl [vmem:[#allocation1 + $0x8] sm:$0xff pattern:$0x75316420]  ;;  %v313_v36 = vld.sshfl [vmem:[#allocation1] sm:$0xff pattern:$0x75316420]  ;;  %527 = vmatpush.msra.mxu0 %v506_v30 }
  0xe0   :  { %318 = vrot.lane.b32.xlu1 %v314_v31, %s734_s30  ;;  %316 = vrot.lane.b32.xlu0 %v313_v36, %s734_s30  ;;  %330 = vst [vmem:[#allocation1] ss:$2 sm:$0xff] %v839_v15  ;;  %v494_v30 = vld [vmem:[#allocation3 + $0x70] sm:$0xff]  ;;  %v490_v31 = vld [vmem:[#allocation3 + $0x20] sm:$0xff] }
  0xe5   :  { %v396_v19 = vld.sshfl [vmem:[#allocation1 + $0x10] sm:$0xff pattern:$0x75316420] }
  0xe6   :  { %400 = vst [vmem:[#allocation3 + $0xa0] sm:$0xf] %v396_v19 }
  0xe7   :  { %439 = vst [vmem:[#allocation1 + $0x10] ss:$2 sm:$0xff] %v841_v16  ;;  %v334_v41 = vld.sshfl [vmem:[#allocation1 + $0x8] sm:$0xff pattern:$0x75316420]  ;;  %v404_v16 = vpop.permute.xlu1 %403 }
  0xe8   :  { %338 = vrot.lane.b32.xlu1 %v334_v41, %s735_s5  ;;  %v333_v42 = vld.sshfl [vmem:[#allocation1] sm:$0xff pattern:$0x75316420]  ;;  %v406_v49 = vrot.slane %v404_v16, 4 }
  0xe9   :  { %336 = vrot.lane.b32.xlu0 %v333_v42, %s735_s5  ;;  %352 = vst [vmem:[#allocation1] ss:$2 sm:$0xff] %v348_v37 }
  0xea   :  { %v407_v51 = vsel %vm101_vm0, %v405_v48, %v406_v49 }
  0xeb   :  { %v408_v53 = vsel %vm192_vm3, %v407_v51, %v404_v16 }
  0xec   :  { %v410_v57 = vmul.f32 %v408_v53, %v797_v12 }
  0xed   :  { %v493_v56 = vld [vmem:[#allocation3 + $0xa0] sm:$0xff] }
  0xee   :  { %v442_v43 = vld.sshfl [vmem:[#allocation1 + $0x18] sm:$0xff pattern:$0x75316420]  ;;  %v441_v44 = vld.sshfl [vmem:[#allocation1 + $0x10] sm:$0xff pattern:$0x75316420] }
  0xef   :  { %447 = vrot.lane.b32.xlu2 %v442_v43, %s733_s29  ;;  %v456_v63 = vpop.permute.xlu1 %455 }
  0xf0   :  { %445 = vrot.lane.b32.xlu1 %v441_v44, %s733_s29  ;;  %v355_v46 = vld.sshfl [vmem:[#allocation1] sm:$0xff pattern:$0x75316420]  ;;  %v356_v47 = vld.sshfl [vmem:[#allocation1 + $0x8] sm:$0xff pattern:$0x75316420] }
  0xf1   :  { %358 = vrot.lane.b32.xlu0 %v355_v46, %s736_s6  ;;  %374 = vst [vmem:[#allocation1] ss:$2 sm:$0xff] %v370_v45  ;;  %v459_v1 = vrot.slane %v456_v63, 4 }
  0xf7   :  { %180 = vrot.lane.b32.xlu2 %v903_v40, %s736_s6 }
  0xf8   :  { %360 = vrot.lane.b32.xlu1 %v356_v47, %s736_s6  ;;  %v377_v50 = vld.sshfl [vmem:[#allocation1] sm:$0xff pattern:$0x75316420]  ;;  %v378_v35 = vld.sshfl [vmem:[#allocation1 + $0x8] sm:$0xff pattern:$0x75316420] }
  0xf9   :  { %380 = vrot.lane.b32.xlu0 %v377_v50, %s732_s28  ;;  %392 = vst [vmem:[#allocation1] ss:$2 sm:$0xff] %v839_v15 }
  0xff   :  { %145 = vrot.lane.b32.xlu2 %v889_v34, %s735_s5  ;;  %v458_v34 = vpop.permute.xlu2 %457 }
 0x100   :  { %382 = vrot.lane.b32.xlu1 %v378_v35, %s732_s28  ;;  %v395_v40 = vld.sshfl [vmem:[#allocation1 + $0x8] sm:$0xff pattern:$0x75316420]  ;;  %v460_v0 = vrot.slane %v458_v34, 4 }
 0x101   :  { %412 = vst [vmem:[#allocation1] ss:$2 sm:$0xff] %v410_v57 }
 0x102   :  { %399 = vst [vmem:[#allocation3 + $0x90] sm:$0xf] %v395_v40  ;;  %v461_v2 = vsel %vm101_vm0, %v459_v1, %v460_v0 }
 0x107   :  { %124 = vrot.lane.b32.xlu2 %v865_v23, %s734_s30  ;;  %v462_v23 = vsel %vm106_vm1, %v461_v2, %v458_v34  ;;  %v211_v5 = vpop.permute.xlu2 %210 }
 0x108   :  { %v413_v61 = vld.sshfl [vmem:[#allocation1] sm:$0xff pattern:$0x75316420]  ;;  %v414_v62 = vld.sshfl [vmem:[#allocation1 + $0x8] sm:$0xff pattern:$0x75316420]  ;;  %178 = vrot.lane.b32.xlu1 %v901_v39, %s736_s6  ;;  %v464_v39 = vmul.f32 %v462_v23, %v797_v12 }
 0x109   :  { %430 = vst [vmem:[#allocation1] ss:$2 sm:$0xff] %v428_v60 }
 0x10a   :  { %417 = vst [vmem:[#allocation3 + $0xe0] sm:$0xf] %v413_v61 }
 0x10b   :  { %418 = vst [vmem:[#allocation3 + $0x60] sm:$0xf] %v414_v62 }
 0x110   :  { %143 = vrot.lane.b32.xlu1 %v887_v33, %s735_s5  ;;  %v431_v8 = vld.sshfl [vmem:[#allocation1] sm:$0xff pattern:$0x75316420]  ;;  %v432_v3 = vld.sshfl [vmem:[#allocation1 + $0x8] sm:$0xff pattern:$0x75316420] }
 0x111   :  { %437 = vst [vmem:[#allocation1] ss:$2 sm:$0xff] %v839_v15 }
 0x112   :  { %435 = vst [vmem:[#allocation3 + $0xd8] sm:$0xf] %v431_v8  ;;  %v497_v55 = vld [vmem:[#allocation3 + $0x60] sm:$0xff] }
 0x113   :  { %436 = vst [vmem:[#allocation3 + $0xc0] sm:$0xf] %v432_v3 }
 0x116   :  { %v277_v12 = vpop.permute.xlu2 %276 }
 0x118   :  { %122 = vrot.lane.b32.xlu1 %v871_v26, %s734_s30  ;;  %v440_v4 = vld.sshfl [vmem:[#allocation1 + $0x8] sm:$0xff pattern:$0x75316420] }
 0x119   :  { %443 = vrot.lane.b32.xlu0 %v440_v4, %s733_s29  ;;  %466 = vst [vmem:[#allocation1] ss:$2 sm:$0xff] %v464_v39  ;;  %v473_v39 = vld [vmem:[%s1019_s1] sm:$0xff] }
 0x11a   :  { %v501_v54 = vld [vmem:[#allocation3 + $0xc0] sm:$0xff] }
 0x11d   :  { %v209_v33 = vpop.permute.xlu1 %208  ;;  %v207_v6 = vpop.permute.xlu0 %206 }
 0x11e   :  { %v214_v7 = vsel %vm212_vm4, %v209_v33, %v211_v5  ;;  %v213_v15 = vsel %vm212_vm4, %v207_v6, %v209_v33 }
 0x11f   :  { %218 = vst [vmem:[#allocation3 + $0x38] sm:$0xf] %v214_v7 }
 0x120   :  { %217 = vst [vmem:[#allocation3 + $0xf8] sm:$0xf] %v213_v15  ;;  %v321_v14 = vpop.permute.xlu2 %320  ;;  %v467_v20 = vld.sshfl [vmem:[#allocation1] sm:$0xff pattern:$0x75316420] }
 0x121   :  { %176 = vrot.lane.b32.xlu0 %v899_v38, %s736_s6  ;;  %v468_v21 = vld.sshfl [vmem:[#allocation1 + $0x8] sm:$0xff pattern:$0x75316420]  ;;  %471 = vst [vmem:[#allocation3 + $0x40] sm:$0xf] %v467_v20 }
 0x122   :  { %472 = vst [vmem:[#allocation3 + $0xe8] sm:$0xf] %v468_v21 }
 0x127   :  { %v486_v19 = vld [vmem:[#allocation3 + $0xf8] sm:$0xff] }
 0x128   :  { %v508_v28 = vld [vmem:[#allocation3 + $0x40] sm:$0xff] }
 0x129   :  { %141 = vrot.lane.b32.xlu0 %v885_v32, %s735_s5  ;;  %v487_v32 = vld [vmem:[#allocation3 + $0x38] sm:$0xff]  ;;  %567 = vmatpush.msra.mxu2 %v508_v28  ;;  %v509_v29 = vld [vmem:[#allocation3 + $0xe8] sm:$0xff] }
 0x12a   :  { %587 = vmatpush.msra.mxu3 %v509_v29 }
 0x12f   :  { %v275_v26 = vpop.permute.xlu1 %274 }
 0x130   :  { %v280_v9 = vsel %vm278_vm5, %v275_v26, %v277_v12  ;;  %v510_v12 = vld [vmem:[%s1020_s2] sm:$0xff] }
 0x131   :  { %120 = vrot.lane.b32.xlu0 %v869_v25, %s734_s30  ;;  %284 = vst [vmem:[#allocation3 + $0xf0] sm:$0xf] %v280_v9  ;;  %v341_v25 = vpop.permute.xlu2 %340 }
 0x138   :  { %v503_v10 = vld [vmem:[#allocation3 + $0xf0] sm:$0xff] }
 0x139   :  { %548 = vmatpush.msra.mxu1 %v503_v10  ;;  %v363_v36 = vpop.permute.xlu2 %362 }
 0x13b   :  { %549 = vmatpush.msra.mxu1 %v499_v11 }
 0x13d   :  { %550 = vmatpush.msra.mxu1 %v495_v17  ;;  %v500_v17 = vld [vmem:[#allocation3 + $0xd8] sm:$0xff] }
 0x13f   :  { %551 = vmatpush.msra.mxu1 %v491_v18  ;;  %v273_v38 = vpop.permute.xlu0 %272  ;;  %v496_v18 = vld [vmem:[#allocation3 + $0xe0] sm:$0xff] }
 0x140   :  { %v279_v13 = vsel %vm278_vm5, %v273_v38, %v275_v26  ;;  %v737_v26 = vmov 0   ;;  %v492_v38 = vld [vmem:[#allocation3 + $0x90] sm:$0xff] }
 0x141   :  { %283 = vst [vmem:[#allocation3 + $0x50] sm:$0xf] %v279_v13  ;;  %552 = vmatpush.msra.mxu1 %v487_v32  ;;  %v385_v44 = vpop.permute.xlu2 %384  ;;  %645 = vset.pattern.permute.xlu0 %v737_v26 }
 0x142   :  { %513 = vperm.xlu0 %645, %v510_v12  }
 0x148   :  { %v502_v22 = vld [vmem:[#allocation3 + $0x50] sm:$0xff] }
 0x149   :  { %528 = vmatpush.msra.mxu0 %v502_v22  ;;  %v448_v16 = vpop.permute.xlu2 %447 }
 0x14b   :  { %529 = vmatpush.msra.mxu0 %v498_v24 }
 0x14d   :  { %530 = vmatpush.msra.mxu0 %v494_v30 }
 0x14f   :  { %531 = vmatpush.msra.mxu0 %v490_v31 }
 0x151   :  { %532 = vmatpush.msra.mxu0 %v486_v19  ;;  %v181_v60 = vpop.permute.xlu2 %180 }
 0x152   :  { %v319_v37 = vpop.permute.xlu1 %318  ;;  %v317_v41 = vpop.permute.xlu0 %316 }
 0x153   :  { %v323_v42 = vsel %vm126_vm6, %v319_v37, %v321_v14  ;;  %v322_v43 = vsel %vm126_vm6, %v317_v41, %v319_v37 }
 0x154   :  { %327 = vst [vmem:[#allocation3 + $0x48] sm:$0xf] %v323_v42 }
 0x155   :  { %326 = vst [vmem:[#allocation3 + $0x10] sm:$0xf] %v322_v43 }
 0x159   :  { %v146_v0 = vpop.permute.xlu2 %145 }
 0x15a   :  { %v339_v45 = vpop.permute.xlu1 %338 }
 0x15b   :  { %v343_v46 = vsel %vm147_vm7, %v339_v45, %v341_v25  ;;  %v337_v27 = vpop.permute.xlu0 %336  ;;  %v477_v8 = vld [vmem:[#allocation3 + $0x48] sm:$0xff] }
 0x15c   :  { %347 = vst [vmem:[#allocation3 + $0x18] sm:$0xf] %v343_v46  ;;  %v342_v47 = vsel %vm147_vm7, %v337_v27, %v339_v45  ;;  %v476_v28 = vld [vmem:[#allocation3 + $0x10] sm:$0xff] }
 0x15d   :  { %346 = vst [vmem:[#allocation3 + $0x30] sm:$0xf] %v342_v47 }
 0x161   :  { %v125_v4 = vpop.permute.xlu2 %124 }
 0x162   :  { %v446_v48 = vpop.permute.xlu1 %445 }
 0x163   :  { %v450_v49 = vsel %vm278_vm5, %v446_v48, %v448_v16  ;;  %v359_v50 = vpop.permute.xlu0 %358  ;;  %v481_v1 = vld [vmem:[#allocation3 + $0x18] sm:$0xff] }
 0x164   :  { %454 = vst [vmem:[#allocation3 + $0x28] sm:$0xf] %v450_v49  ;;  %v480_v22 = vld [vmem:[#allocation3 + $0x30] sm:$0xff] }
 0x16a   :  { %v361_v35 = vpop.permute.xlu1 %360 }
 0x16b   :  { %v364_v51 = vsel %vm182_vm8, %v359_v50, %v361_v35  ;;  %v365_v52 = vsel %vm182_vm8, %v361_v35, %v363_v36  ;;  %v505_v53 = vld [vmem:[#allocation3 + $0x28] sm:$0xff]  ;;  %v381_v57 = vpop.permute.xlu0 %380 }
 0x16c   :  { %368 = vst [vmem:[#allocation3 + $0x118] sm:$0xf] %v364_v51  ;;  %588 = vmatpush.msra.mxu3 %v505_v53 }
 0x16d   :  { %369 = vst [vmem:[#allocation3 + $0x98] sm:$0xf] %v365_v52 }
 0x16e   :  { %589 = vmatpush.msra.mxu3 %v501_v54 }
 0x170   :  { %590 = vmatpush.msra.mxu3 %v497_v55 }
 0x172   :  { %v383_v40 = vpop.permute.xlu1 %382  ;;  %591 = vmatpush.msra.mxu3 %v493_v56 }
 0x173   :  { %v386_v58 = vsel %vm212_vm4, %v381_v57, %v383_v40  ;;  %v387_v59 = vsel %vm212_vm4, %v383_v40, %v385_v44  ;;  %v484_v25 = vld [vmem:[#allocation3 + $0x118] sm:$0xff] }
 0x174   :  { %390 = vst [vmem:[#allocation3 + $0x8] sm:$0xf] %v386_v58  ;;  %v485_v63 = vld [vmem:[#allocation3 + $0x98] sm:$0xff] }
 0x175   :  { %391 = vst [vmem:[#allocation3 + $0x78] sm:$0xf] %v387_v59 }
 0x17a   :  { %v179_v61 = vpop.permute.xlu1 %178 }
 0x17b   :  { %v184_v62 = vsel %vm182_vm8, %v179_v61, %v181_v60  ;;  %v488_v21 = vld [vmem:[#allocation3 + $0x8] sm:$0xff] }
 0x17c   :  { %188 = vst [vmem:[#allocation3 + $0x110] sm:$0xf] %v184_v62  ;;  %v489_v34 = vld [vmem:[#allocation3 + $0x78] sm:$0xff] }
 0x17d   :  { %592 = vmatpush.msra.mxu3 %v489_v34 }
 0x17f   :  { %593 = vmatpush.msra.mxu3 %v485_v63 }
 0x181   :  { %594 = vmatpush.msra.mxu3 %v481_v1 }
 0x182   :  { %v144_v2 = vpop.permute.xlu1 %143 }
 0x183   :  { %v149_v3 = vsel %vm147_vm7, %v144_v2, %v146_v0  ;;  %595 = vmatpush.msra.mxu3 %v477_v8  ;;  %v483_v23 = vld [vmem:[#allocation3 + $0x110] sm:$0xff] }
 0x184   :  { %153 = vst [vmem:[#allocation3 + $0x68] sm:$0xf] %v149_v3  ;;  %553 = vmatpush.msra.mxu1 %v483_v23  ;;  %628 = vmatmul.msk.f32.vlgmr.msra.gmra.mxu3 %vm516_vm9, %v473_v39 }
 0x18a   :  { %v123_v5 = vpop.permute.xlu1 %122 }
 0x18b   :  { %v128_v33 = vsel %vm126_vm6, %v123_v5, %v125_v4  ;;  %v444_v6 = vpop.permute.xlu0 %443  ;;  %v479_v7 = vld [vmem:[#allocation3 + $0x68] sm:$0xff] }
 0x18c   :  { %132 = vst [vmem:[#allocation3 + $0xd0] sm:$0xf] %v128_v33  ;;  %v449_v15 = vsel %vm278_vm5, %v444_v6, %v446_v48  ;;  %554 = vmatpush.msra.mxu1 %v479_v7 }
 0x18d   :  { %453 = vst [vmem:[#allocation3 + $0xb8] sm:$0xf] %v449_v15 }
 0x193   :  { %v177_v9 = vpop.permute.xlu0 %176  ;;  %v475_v10 = vld [vmem:[#allocation3 + $0xd0] sm:$0xff] }
 0x194   :  { %v183_v11 = vsel %vm182_vm8, %v177_v9, %v179_v61  ;;  %555 = vmatpush.msra.mxu1 %v475_v10  ;;  %v504_v14 = vld [vmem:[#allocation3 + $0xb8] sm:$0xff] }
 0x195   :  { %187 = vst [vmem:[#allocation3 + $0x80] sm:$0xf] %v183_v11  ;;  %568 = vmatpush.msra.mxu2 %v504_v14  ;;  %626 = vmatmul.msk.f32.vlgmr.msra.gmra.mxu1 %vm516_vm9, %v473_v39 }
 0x197   :  { %569 = vmatpush.msra.mxu2 %v500_v17 }
 0x199   :  { %570 = vmatpush.msra.mxu2 %v496_v18 }
 0x19b   :  { %v142_v32 = vpop.permute.xlu0 %141  ;;  %571 = vmatpush.msra.mxu2 %v492_v38 }
 0x19c   :  { %v148_v13 = vsel %vm147_vm7, %v142_v32, %v144_v2  ;;  %v482_v20 = vld [vmem:[#allocation3 + $0x80] sm:$0xff] }
 0x19d   :  { %152 = vst [vmem:[#allocation3 + $0x108] sm:$0xf] %v148_v13  ;;  %533 = vmatpush.msra.mxu0 %v482_v20  ;;  %572 = vmatpush.msra.mxu2 %v488_v21 }
 0x19f   :  { %573 = vmatpush.msra.mxu2 %v484_v25 }
 0x1a1   :  { %574 = vmatpush.msra.mxu2 %v480_v22 }
 0x1a3   :  { %v121_v24 = vpop.permute.xlu0 %120  ;;  %575 = vmatpush.msra.mxu2 %v476_v28 }
 0x1a4   :  { %v127_v29 = vsel %vm126_vm6, %v121_v24, %v123_v5  ;;  %v478_v30 = vld [vmem:[#allocation3 + $0x108] sm:$0xff]  ;;  %627 = vmatmul.msk.f32.vlgmr.msra.gmra.mxu2 %vm516_vm9, %v473_v39 }
 0x1a5   :  { %131 = vst [vmem:[#allocation3 + $0xb0] sm:$0xf] %v127_v29  ;;  %534 = vmatpush.msra.mxu0 %v478_v30 }
 0x1ac   :  { %v474_v31 = vld [vmem:[#allocation3 + $0xb0] sm:$0xff] }
 0x1ad   :  { %535 = vmatpush.msra.mxu0 %v474_v31 }
 0x1ae   :  { %625 = vmatmul.msk.f32.vlgmr.msra.gmra.mxu0 %vm516_vm9, %v473_v39 }
 0x1b4   :  { %v514_v36 = vpop.permute.xlu0 %513 }
 0x207   :  { %v597_v19 = vpop.f32.mrf.mxu3 }
 0x208   :  { %v598_v37 = vadd.f32 %v597_v19, %v514_v36 }
 0x20a   :  { %604 = vst [vmem:[#allocation9 + $0x18] sm:$0xff] %v598_v37 }
 0x212   :  { %v557_v41 = vpop.f32.mrf.mxu1 }
 0x213   :  { %v558_v42 = vadd.f32 %v557_v41, %v514_v36 }
 0x215   :  { %601 = vst [vmem:[#allocation9 + $0x8] sm:$0xff] %v558_v42 }
 0x227   :  { %v577_v43 = vpop.f32.mrf.mxu2 }
 0x228   :  { %v578_v44 = vadd.f32 %v577_v43, %v514_v36 }
 0x22a   :  { %603 = vst [vmem:[#allocation9 + $0x10] sm:$0xff] %v578_v44 }
 0x22b   :  { %v537_v45 = vpop.f32.mrf.mxu0 }
 0x22c   :  { %v538_v46 = vadd.f32 %v537_v45, %v514_v36 }
 0x22e   :  { %600 = vst [vmem:[#allocation9] sm:$0xff] %v538_v46 }
 0x22f   :  { %617 = dma.vmem_to_hbm [thread:$0]  %s610_s13, 512, %s612_s11, [#allocation6], %s739_s14, %s739_s14, %s735_s5  }
 0x230   :  { %722 = dma.done.wait [#allocation6], 512  }
 0x231   :  { %723 = vsyncadd [#allocation6], 4294966784 }
 0x232   :  { %622 = vsyncpa [#allocation5], 1 }
 0x233   :  { %623 = vsyncpa [#allocation8], 1 }
 0x234   :  { %624 = vsyncpa [#allocation6], 1 }

</bundles_post_ra>
